<compile_context>
chip_gen: v5e
topology: v5e:2x2
jax: 0.10.0
libtpu: 0.0.40
codegen_flags: <defaults>
</compile_context>

<pallas_src>
import functools

import jax
import jax.numpy as jnp
from jax.experimental import pallas as pl
from jax.experimental.pallas import tpu as pltpu


def _round_up(a, m):
    return ((a + m - 1) // m) * m


def _dice_partial_kernel(x_ref, t_ref, inter_out, total_out, inter_acc, total_acc,
                         *, spc, tile_rows, valid_rows, needs_mask):
    """Grid = (chunks, steps). Each chunk streams its row-blocks and keeps
    vreg-sized (8,128) f32 partial sums of (s*t) and (s+t); the last step of a
    chunk copies the partials to that chunk's output block."""
    c = pl.program_id(0)
    i = pl.program_id(1)

    @pl.when(i == 0)
    def _init():
        inter_acc[...] = jnp.zeros_like(inter_acc)
        total_acc[...] = jnp.zeros_like(total_acc)

    x = x_ref[...].astype(jnp.float32)
    t = t_ref[...].astype(jnp.float32)
    # Single-transcendental sigmoid (one EUP push instead of exp + reciprocal).
    s = 0.5 * (jnp.tanh(0.5 * x) + 1.0)

    def accum(sv, tv):
        # Reduce each (tile_rows,128) block down to one vreg of partials:
        # pure VPU adds across sublane-tiles, no accumulator RMW per vreg.
        inter_acc[...] += jnp.sum((sv * tv).reshape(-1, 8, 128), axis=0)
        total_acc[...] += jnp.sum((sv + tv).reshape(-1, 8, 128), axis=0)

    if not needs_mask:
        accum(s, t)
    else:
        gstep = c * spc + i                       # global (unclamped) block index
        is_full = (gstep + 1) * tile_rows <= valid_rows

        @pl.when(is_full)
        def _full():
            accum(s, t)

        @pl.when(jnp.logical_not(is_full))
        def _partial():
            # Partial (or fully OOB duplicate) block: OOB reads are undefined,
            # so mask with a select (NaN-safe) before accumulating.
            rows_left = valid_rows - gstep * tile_rows   # may be <= 0
            row = jax.lax.broadcasted_iota(jnp.int32, s.shape, 0)
            m = row < rows_left
            accum(jnp.where(m, s, 0.0), jnp.where(m, t, 0.0))

    @pl.when(i == pl.num_programs(1) - 1)
    def _finalize():
        inter_out[0] = inter_acc[...]
        total_out[0] = total_acc[...]


def dice_loss(inputs, targets, smooth=1.0, *, block_rows=None):
    """Pallas-accelerated DiceLoss.forward. Accepts arbitrary matching-size
    shapes and arbitrary (narrow) input dtypes; accumulation is f32.
    `block_rows` optionally overrides the row-block size (testing/tuning)."""
    smooth = float(smooth)
    x = inputs.reshape(-1)       # free (bitcast)
    t = targets.reshape(-1)
    n = x.shape[0]

    # --- tail: trailing n % 128 elements reduced with plain jnp (tiny) ------
    rem = n % 128
    if rem:
        tx = x[n - rem:].astype(jnp.float32)
        tt = t[n - rem:].astype(jnp.float32)
        ts = jax.nn.sigmoid(tx)
        tail_inter = jnp.sum(ts * tt)
        tail_total = jnp.sum(ts) + jnp.sum(tt)
        # TODO(synk): this prefix slice still copies the 128-aligned prefix; a
        # fully copy-free path needs a 1-D memory_space=pl.ANY manual-DMA kernel.
        x = x[: n - rem]
        t = t[: n - rem]
    else:
        tail_inter = jnp.float32(0.0)
        tail_total = jnp.float32(0.0)

    R = (n - rem) // 128
    if R == 0:  # everything fit in the tail
        return (2.0 * tail_inter + smooth) / (tail_total + smooth)

    x2 = x.reshape(R, 128)       # free (bitcast): n - rem is a multiple of 128
    t2 = t.reshape(R, 128)

    # --- dtype-scaled tiling -------------------------------------------------
    x_is, t_is = x2.dtype.itemsize, t2.dtype.itemsize
    sub = max(8, 32 // x_is, 32 // t_is)          # packed sublane multiple
    target_bytes = 2 << 20                        # ~2 MiB DMA / stream / step
    max_rows = max(sub, (target_bytes // (128 * max(x_is, t_is))) // sub * sub)
    if block_rows is not None:
        max_rows = max(sub, _round_up(int(block_rows), sub))
    tile_rows = min(max_rows, _round_up(R, sub))

    nsteps = -(-R // tile_rows)                   # row-blocks covering R
    nchunks = 2 if nsteps >= 2 else 1             # v7x: one chunk per TensorCore
    spc = -(-nsteps // nchunks)                   # steps per chunk
    needs_clamp = (nchunks * spc != nsteps)       # odd nsteps -> 1 duplicate block
    needs_mask = (nchunks * spc * tile_rows != R)

    if needs_clamp:
        def in_index(c, i):
            return (jnp.minimum(c * spc + i, nsteps - 1), 0)
    else:
        def in_index(c, i):
            return (c * spc + i, 0)

    kernel = functools.partial(
        _dice_partial_kernel,
        spc=spc, tile_rows=tile_rows, valid_rows=R, needs_mask=needs_mask,
    )

    block_bytes = tile_rows * 128 * (x_is + t_is)
    vmem_limit = int(min(max(4 * block_bytes + (8 << 20), 16 << 20), 48 << 20))

    out_inter, out_total = pl.pallas_call(
        kernel,
        out_shape=(jax.ShapeDtypeStruct((nchunks, 8, 128), jnp.float32),
                   jax.ShapeDtypeStruct((nchunks, 8, 128), jnp.float32)),
        grid_spec=pltpu.PrefetchScalarGridSpec(
            num_scalar_prefetch=0,
            grid=(nchunks, spc),
            in_specs=[pl.BlockSpec((tile_rows, 128), in_index),
                      pl.BlockSpec((tile_rows, 128), in_index)],
            out_specs=(pl.BlockSpec((1, 8, 128), lambda c, i: (c, 0, 0)),
                       pl.BlockSpec((1, 8, 128), lambda c, i: (c, 0, 0))),
            scratch_shapes=[pltpu.VMEM((8, 128), jnp.float32),
                            pltpu.VMEM((8, 128), jnp.float32)],
        ),
        compiler_params=pltpu.CompilerParams(
            dimension_semantics=("parallel", "arbitrary"),
            vmem_limit_bytes=vmem_limit,
        ),
    )(x2, t2)

    inter = jnp.sum(out_inter) + tail_inter
    total = jnp.sum(out_total) + tail_total
    return (2.0 * inter + smooth) / (total + smooth)


def dice_loss_ref(inputs, targets, smooth=1.0):
    s = jax.nn.sigmoid(inputs.reshape(-1).astype(jnp.float32))
    t = targets.reshape(-1).astype(jnp.float32)
    inter = jnp.sum(s * t)
    return (2.0 * inter + smooth) / (jnp.sum(s) + jnp.sum(t) + smooth)


if __name__ == "__main__":
    key = jax.random.PRNGKey(0)
    k_in, k_tg = jax.random.split(key)

    # 1) Base NCHW case: size divisible by 128, single full block, no masking.
    x = jax.random.normal(k_in, (2, 4, 16, 16), dtype=jnp.float32)
    tgt = (jax.random.uniform(k_tg, (2, 4, 16, 16)) > 0.5).astype(jnp.float32)
    out = jax.block_until_ready(dice_loss(x, tgt, smooth=1.0))
    ref = dice_loss_ref(x, tgt, smooth=1.0)
    assert jnp.allclose(out, ref, atol=1e-5, rtol=1e-5), (out, ref)

    # 2) Size not divisible by 128: wrapper-side tail + masked partial block,
    #    no whole-tensor padding.
    x2 = jax.random.normal(k_in, (3, 5, 17, 13), dtype=jnp.float32)
    t2 = (jax.random.uniform(k_tg, (3, 5, 17, 13)) > 0.5).astype(jnp.float32)
    out2 = jax.block_until_ready(dice_loss(x2, t2, smooth=1.0))
    ref2 = dice_loss_ref(x2, t2, smooth=1.0)
    assert jnp.allclose(out2, ref2, atol=1e-5, rtol=1e-5), (out2, ref2)

    # 3) bf16 inputs + small forced block: exercises the multi-step grid, the
    #    2-chunk parallel split, the clamped duplicate block and row masking.
    x3 = jax.random.normal(k_in, (2, 4, 32, 33), dtype=jnp.float32).astype(jnp.bfloat16)
    t3 = (jax.random.uniform(k_tg, (2, 4, 32, 33)) > 0.5).astype(jnp.bfloat16)
    out3 = jax.block_until_ready(dice_loss(x3, t3, smooth=1.0, block_rows=16))
    ref3 = dice_loss_ref(x3, t3, smooth=1.0)
    assert jnp.allclose(out3, ref3, atol=1e-4, rtol=1e-4), (out3, ref3)

    print("KERNEL_OK")
</pallas_src>

<mosaic_0001>
module attributes {stable_mosaic.version = 11 : i64} {
  func.func @_dice_partial_kernel(%arg0: i32, %arg1: i32, %arg2: memref<16x128xf32, #tpu.memory_space<vmem>>, %arg3: memref<16x128xf32, #tpu.memory_space<vmem>>, %arg4: memref<1x8x128xf32, #tpu.memory_space<vmem>>, %arg5: memref<1x8x128xf32, #tpu.memory_space<vmem>>, %arg6: memref<8x128xf32, #tpu.memory_space<vmem>>, %arg7: memref<8x128xf32, #tpu.memory_space<vmem>>) attributes {dimension_semantics = [#tpu.dimension_semantics<parallel>, #tpu.dimension_semantics<arbitrary>], iteration_bounds = array<i64: 1, 1>, scalar_prefetch = 0 : i64, scratch_operands = 2 : i64, tpu.core_type = #tpu.core_type<tc>, window_params = [{transform_indices = @transform_0, window_bounds = array<i64: 16, 128>}, {transform_indices = @transform_1, window_bounds = array<i64: 16, 128>}, {transform_indices = @transform_2, window_bounds = array<i64: 1, 8, 128>}, {transform_indices = @transform_3, window_bounds = array<i64: 1, 8, 128>}]} {
    %c0_i32 = arith.constant 0 : i32
    %0 = arith.cmpi eq, %arg1, %c0_i32 : i32
    %1 = arith.extui %0 : i1 to i32
    %c0_i32_0 = arith.constant 0 : i32
    %2 = arith.cmpi ne, %1, %c0_i32_0 : i32
    scf.if %2 {
      %cst_18 = arith.constant 0.000000e+00 : f32
      %27 = vector.broadcast %cst_18 : f32 to vector<8x128xf32>
      %c0_19 = arith.constant 0 : index
      %c0_20 = arith.constant 0 : index
      %28 = vector.load %arg6[%c0_19, %c0_20] : memref<8x128xf32, #tpu.memory_space<vmem>>, vector<8x128xf32>
      tpu.vector_store %arg6[%c0_19, %c0_20], %27 {strides = array<i32>} : memref<8x128xf32, #tpu.memory_space<vmem>>, vector<8x128xf32>,
      %cst_21 = arith.constant 0.000000e+00 : f32
      %29 = vector.broadcast %cst_21 : f32 to vector<8x128xf32>
      %c0_22 = arith.constant 0 : index
      %c0_23 = arith.constant 0 : index
      %30 = vector.load %arg7[%c0_22, %c0_23] : memref<8x128xf32, #tpu.memory_space<vmem>>, vector<8x128xf32>
      tpu.vector_store %arg7[%c0_22, %c0_23], %29 {strides = array<i32>} : memref<8x128xf32, #tpu.memory_space<vmem>>, vector<8x128xf32>,
    } else {
    }
    %c0 = arith.constant 0 : index
    %c0_1 = arith.constant 0 : index
    %3 = vector.load %arg2[%c0, %c0_1] : memref<16x128xf32, #tpu.memory_space<vmem>>, vector<16x128xf32>
    %c0_2 = arith.constant 0 : index
    %c0_3 = arith.constant 0 : index
    %4 = vector.load %arg3[%c0_2, %c0_3] : memref<16x128xf32, #tpu.memory_space<vmem>>, vector<16x128xf32>
    %cst = arith.constant 5.000000e-01 : f32
    %5 = vector.broadcast %cst : f32 to vector<16x128xf32>
    %6 = arith.mulf %5, %3 : vector<16x128xf32>
    %7 = math.tanh %6 : vector<16x128xf32>
    %cst_4 = arith.constant 1.000000e+00 : f32
    %8 = vector.broadcast %cst_4 : f32 to vector<16x128xf32>
    %9 = arith.addf %7, %8 : vector<16x128xf32>
    %cst_5 = arith.constant 5.000000e-01 : f32
    %10 = vector.broadcast %cst_5 : f32 to vector<16x128xf32>
    %11 = arith.mulf %10, %9 : vector<16x128xf32>
    %c0_6 = arith.constant 0 : index
    %c0_7 = arith.constant 0 : index
    %12 = vector.load %arg6[%c0_6, %c0_7] : memref<8x128xf32, #tpu.memory_space<vmem>>, vector<8x128xf32>
    %13 = arith.mulf %11, %4 : vector<16x128xf32>
    %14 = vector.shape_cast %13 : vector<16x128xf32> to vector<2x8x128xf32>
    %cst_8 = arith.constant dense<0.000000e+00> : vector<8x128xf32>
    %15 = vector.multi_reduction <add>, %14, %cst_8 [0] : vector<2x8x128xf32> to vector<8x128xf32>
    %16 = arith.addf %12, %15 : vector<8x128xf32>
    %c0_9 = arith.constant 0 : index
    %c0_10 = arith.constant 0 : index
    %17 = vector.load %arg6[%c0_9, %c0_10] : memref<8x128xf32, #tpu.memory_space<vmem>>, vector<8x128xf32>
    tpu.vector_store %arg6[%c0_9, %c0_10], %16 {strides = array<i32>} : memref<8x128xf32, #tpu.memory_space<vmem>>, vector<8x128xf32>,
    %c0_11 = arith.constant 0 : index
    %c0_12 = arith.constant 0 : index
    %18 = vector.load %arg7[%c0_11, %c0_12] : memref<8x128xf32, #tpu.memory_space<vmem>>, vector<8x128xf32>
    %19 = arith.addf %11, %4 : vector<16x128xf32>
    %20 = vector.shape_cast %19 : vector<16x128xf32> to vector<2x8x128xf32>
    %cst_13 = arith.constant dense<0.000000e+00> : vector<8x128xf32>
    %21 = vector.multi_reduction <add>, %20, %cst_13 [0] : vector<2x8x128xf32> to vector<8x128xf32>
    %22 = arith.addf %18, %21 : vector<8x128xf32>
    %c0_14 = arith.constant 0 : index
    %c0_15 = arith.constant 0 : index
    %23 = vector.load %arg7[%c0_14, %c0_15] : memref<8x128xf32, #tpu.memory_space<vmem>>, vector<8x128xf32>
    tpu.vector_store %arg7[%c0_14, %c0_15], %22 {strides = array<i32>} : memref<8x128xf32, #tpu.memory_space<vmem>>, vector<8x128xf32>,
    %c0_i32_16 = arith.constant 0 : i32
    %24 = arith.cmpi eq, %arg1, %c0_i32_16 : i32
    %25 = arith.extui %24 : i1 to i32
    %c0_i32_17 = arith.constant 0 : i32
    %26 = arith.cmpi ne, %25, %c0_i32_17 : i32
    scf.if %26 {
      %c0_18 = arith.constant 0 : index
      %c0_19 = arith.constant 0 : index
      %27 = vector.load %arg6[%c0_18, %c0_19] : memref<8x128xf32, #tpu.memory_space<vmem>>, vector<8x128xf32>
      %c0_20 = arith.constant 0 : index
      %c0_21 = arith.constant 0 : index
      %c0_22 = arith.constant 0 : index
      %28 = vector.load %arg4[%c0_20, %c0_21, %c0_22] : memref<1x8x128xf32, #tpu.memory_space<vmem>>, vector<1x8x128xf32>
      %29 = vector.shape_cast %28 : vector<1x8x128xf32> to vector<8x128xf32>
      %30 = vector.shape_cast %27 : vector<8x128xf32> to vector<1x8x128xf32>
      tpu.vector_store %arg4[%c0_20, %c0_21, %c0_22], %30 {strides = array<i32>} : memref<1x8x128xf32, #tpu.memory_space<vmem>>, vector<1x8x128xf32>,
      %c0_23 = arith.constant 0 : index
      %c0_24 = arith.constant 0 : index
      %31 = vector.load %arg7[%c0_23, %c0_24] : memref<8x128xf32, #tpu.memory_space<vmem>>, vector<8x128xf32>
      %c0_25 = arith.constant 0 : index
      %c0_26 = arith.constant 0 : index
      %c0_27 = arith.constant 0 : index
      %32 = vector.load %arg5[%c0_25, %c0_26, %c0_27] : memref<1x8x128xf32, #tpu.memory_space<vmem>>, vector<1x8x128xf32>
      %33 = vector.shape_cast %32 : vector<1x8x128xf32> to vector<8x128xf32>
      %34 = vector.shape_cast %31 : vector<8x128xf32> to vector<1x8x128xf32>
      tpu.vector_store %arg5[%c0_25, %c0_26, %c0_27], %34 {strides = array<i32>} : memref<1x8x128xf32, #tpu.memory_space<vmem>>, vector<1x8x128xf32>,
    } else {
    }
    return
  }
  func.func @transform_0(%arg0: i32, %arg1: i32) -> (i32, i32) {
    %c1_i32 = arith.constant 1 : i32
    %0 = arith.muli %arg0, %c1_i32 : i32
    %1 = arith.addi %0, %arg1 : i32
    %c0_i32 = arith.constant 0 : i32
    %c0_i32_0 = arith.constant 0 : i32
    return %1, %c0_i32 : i32, i32
  }
  func.func @transform_1(%arg0: i32, %arg1: i32) -> (i32, i32) {
    %c1_i32 = arith.constant 1 : i32
    %0 = arith.muli %arg0, %c1_i32 : i32
    %1 = arith.addi %0, %arg1 : i32
    %c0_i32 = arith.constant 0 : i32
    %c0_i32_0 = arith.constant 0 : i32
    return %1, %c0_i32 : i32, i32
  }
  func.func @transform_2(%arg0: i32, %arg1: i32) -> (i32, i32, i32) {
    %c0_i32 = arith.constant 0 : i32
    %c0_i32_0 = arith.constant 0 : i32
    %c0_i32_1 = arith.constant 0 : i32
    return %arg0, %c0_i32, %c0_i32_0 : i32, i32, i32
  }
  func.func @transform_3(%arg0: i32, %arg1: i32) -> (i32, i32, i32) {
    %c0_i32 = arith.constant 0 : i32
    %c0_i32_0 = arith.constant 0 : i32
    %c0_i32_1 = arith.constant 0 : i32
    return %arg0, %c0_i32, %c0_i32_0 : i32, i32, i32
  }
}

</mosaic_0001>

<bundles_post_ra>
// kernel: tpu_custom_call.1
= control target key start
LH: loop header
LB: loop body
LE: loop exit
PB: predicated region body
PF: predicated region fallthrough
CT: control target
= control target key end

     0   :  { %9 = vsyncpa [#allocation5], 0  ;;  %s282_s0 = inlined_call_operand.hbm [shape: f32[16,128], index: 0, kind: input, shape index: {}]   ;;  %s283_s1 = inlined_call_operand.hbm [shape: f32[16,128], index: 1, kind: input, shape index: {}]   ;;  %s284_s2 = inlined_call_operand.hbm [shape: f32[1,8,128], index: 2, kind: output, shape index: {0}]   ;;  %s285_s3 = inlined_call_operand.hbm [shape: f32[1,8,128], index: 3, kind: output, shape index: {1}]  }
   0x1   :  { %10 = vsyncpa [#allocation8], 0 }
   0x2   :  { %11 = vsyncpa [#allocation6], 0 }
   0x3   :  { %12 = vsyncpa [#allocation11], 0  ;;  %s21_s14 = sshll.u32 %s282_s0, 4  ;;  %s244_s15 = smov [#allocation4]   ;;  %s22_s14 = int_to_ptr.hbm [resolvable:$true] %s21_s14 }
   0x4   :  { %s23_s16 = sshll.u32 %s244_s15, 4  ;;  %s38_s19 = sshll.u32 %s283_s1, 4  ;;  %s24_s16 = int_to_ptr.vmem [resolvable:$true] %s23_s16  ;;  %s39_s19 = int_to_ptr.hbm [resolvable:$true] %s38_s19 }
   0x5   :  { %s245_s20 = smov 128   ;;  %s246_s21 = smov 8  }
   0x6   :  { %29 = dma.hbm_to_vmem [thread:$0]  %s22_s14, 256, %s24_s16, [#allocation5], %s245_s20, %s245_s20, %s246_s21  }
   0x7   :  { %s247_s22 = smov [#allocation7]  }
   0x8   :  { %s40_s23 = sshll.u32 %s247_s22, 4  ;;  %s41_s23 = int_to_ptr.vmem [resolvable:$true] %s40_s23 }
   0x9   :  { %46 = dma.hbm_to_vmem [thread:$0]  %s39_s19, 256, %s41_s23, [#allocation8], %s245_s20, %s245_s20, %s246_s21  }
   0xa   :  { %236 = dma.done.wait [#allocation5], 256  }
   0xb   :  { %237 = vsyncadd [#allocation5], 4294967040 }
   0xc   :  { %238 = dma.done.wait [#allocation8], 256  }
   0xd   :  { %239 = vsyncadd [#allocation8], 4294967040  ;;  %v65_v0 = vld [vmem:[#allocation4] sm:$0xff]  ;;  %v66_v1 = vld [vmem:[#allocation4 + $0x8] sm:$0xff]  ;;  %s248_s0 = smov [#allocation9]   ;;  %s103_s26 = sshll.u32 %s284_s2, 4  ;;  %s104_s26 = int_to_ptr.hbm [resolvable:$true] %s103_s26 }
   0xe   :  { %v69_v2 = vmul.f32 0.5, %v65_v0  ;;  %v70_v3 = vmul.f32 0.5, %v66_v1  ;;  %v67_v7 = vld [vmem:[#allocation7] sm:$0xff]  ;;  %v68_v9 = vld [vmem:[#allocation7 + $0x8] sm:$0xff]  ;;  %s101_s1 = sshll.u32 %s248_s0, 4  ;;  %s249_s27 = smov [#allocation10]   ;;  %s102_s1 = int_to_ptr.vmem [resolvable:$true] %s101_s1 }
   0xf   :  { %s112_s28 = sshll.u32 %s249_s27, 4  ;;  %s114_s4 = sshll.u32 %s285_s3, 4  ;;  %s113_s28 = int_to_ptr.vmem [resolvable:$true] %s112_s28  ;;  %s115_s4 = int_to_ptr.hbm [resolvable:$true] %s114_s4 }
  0x10   :  { %136 = vtanh.f32 %v69_v2 }
  0x11   :  { %138 = vtanh.f32 %v70_v3 }
  0x16   :  { %v137_v4 = vpop.eup %136 }
  0x17   :  { %v139_v5 = vpop.eup %138  ;;  %v73_v6 = vadd.f32 1.0, %v137_v4 }
  0x18   :  { %v74_v8 = vadd.f32 1.0, %v139_v5 }
  0x19   :  { %v75_v10 = vmul.f32 0.5, %v73_v6 }
  0x1a   :  { %v76_v11 = vmul.f32 0.5, %v74_v8 }
  0x1b   :  { %v78_v12 = vmul.f32 %v75_v10, %v67_v7  ;;  %v84_v13 = vadd.f32 %v75_v10, %v67_v7 }
  0x1c   :  { %v79_v14 = vmul.f32 %v76_v11, %v68_v9  ;;  %v85_v15 = vadd.f32 %v76_v11, %v68_v9 }
  0x1e   :  { %v80_v16 = vadd.f32 %v79_v14, %v78_v12  ;;  %v86_v17 = vadd.f32 %v85_v15, %v84_v13 }
  0x20   :  { %93 = vst [vmem:[#allocation9] sm:$0xff] %v80_v16 }
  0x21   :  { %95 = vst [vmem:[#allocation10] sm:$0xff] %v86_v17  ;;  %106 = dma.vmem_to_hbm [thread:$0]  %s102_s1, 128, %s104_s26, [#allocation6]  }
  0x22   :  { %117 = dma.vmem_to_hbm [thread:$0]  %s113_s28, 128, %s115_s4, [#allocation11]  }
  0x23   :  { %240 = dma.done.wait [#allocation6], 128  }
  0x24   :  { %241 = vsyncadd [#allocation6], 4294967168 }
  0x25   :  { %242 = dma.done.wait [#allocation11], 128  }
  0x26   :  { %243 = vsyncadd [#allocation11], 4294967168 }
  0x27   :  { %126 = vsyncpa [#allocation5], 1 }
  0x28   :  { %127 = vsyncpa [#allocation8], 1 }
  0x29   :  { %128 = vsyncpa [#allocation6], 1 }
  0x2a   :  { %129 = vsyncpa [#allocation11], 1 }

</bundles_post_ra>
